<compile_context>
chip_gen: v7x
topology: tpu7x:2x2x1
jax: 0.10.0
libtpu: 0.0.40
codegen_flags: <defaults>
</compile_context>

<pallas_src>
import numpy as np

import jax
import jax.numpy as jnp
from jax.experimental import pallas as pl
from jax.experimental.pallas import tpu as pltpu

K_PAD = 128      # im2col contraction dim (9*Cin) padded to a full lane width
CB_PAD = 128     # backbone channels padded to a full lane width
NCLS_PAD = 128   # CTC classes padded to a full lane width


# ----------------------------- Pallas kernel ------------------------------- #

def fused_rec_kernel(x_ref, cw_ref, cb_ref, hw_ref, hb_ref, out_ref):
    """One grid step = one batch element b (whole backbone+neck+head).

    x_ref   : (H*W, K_PAD)      bf16  im2col patches for batch b (zero-padded K)
    cw_ref  : (K_PAD, CB_PAD)   bf16  conv weight, flattened (dh, dw, Cin) x Cb
    cb_ref  : (1, CB_PAD)       f32   conv bias (zero in padded channels)
    hw_ref  : (CB_PAD, NCLS_PAD) bf16 head weight, pre-scaled by 1/H (mean fold)
    hb_ref  : (1, NCLS_PAD)     f32   head bias (zero in padded classes)
    out_ref : (W, NCLS_PAD)     f32   CTC logits for batch b
    """
    w_len = out_ref.shape[0]
    hw_len = x_ref.shape[0]
    h_len = hw_len // w_len

    # Backbone conv: one im2col MXU matmul (bf16 in, f32 acc), bias + ReLU once.
    conv = jnp.dot(x_ref[...], cw_ref[...], preferred_element_type=jnp.float32)
    conv = jnp.maximum(conv + cb_ref[...], 0.0)                  # (H*W, CB_PAD) f32

    # Mean-pool over H (sum; 1/H folded into head weights) == neck Im2Seq output.
    pooled = jnp.sum(conv.reshape(h_len, w_len, CB_PAD), axis=0)  # (W, CB_PAD) f32

    # CTC head.
    logits = jnp.dot(pooled.astype(jnp.bfloat16), hw_ref[...],
                     preferred_element_type=jnp.float32)
    out_ref[...] = logits + hb_ref[...]


# ------------------------------ parameters --------------------------------- #

def make_params(in_channels=4, backbone_channels=32, n_class=37, seed=0):
    """Deterministic synthetic parameters in PyTorch layout (no checkpoint loading)."""
    key = jax.random.PRNGKey(seed)
    k1, k2, k3, k4 = jax.random.split(key, 4)
    return {
        # nn.Conv2d: weight (Cout, Cin, kh, kw), bias (Cout,)
        "conv_w": jax.random.normal(k1, (backbone_channels, in_channels, 3, 3),
                                    jnp.float32) * 0.1,
        "conv_b": jax.random.normal(k2, (backbone_channels,), jnp.float32) * 0.1,
        # nn.Linear (CTC head): weight (n_class, Cb), bias (n_class,)
        "head_w": jax.random.normal(k3, (n_class, backbone_channels),
                                    jnp.float32) * 0.1,
        "head_b": jax.random.normal(k4, (n_class,), jnp.float32) * 0.1,
    }


def prepare_kernel_params(params, height):
    """Pad / transpose / cast PyTorch-layout params to the kernel layout (done once)."""
    conv_w, conv_b = params["conv_w"], params["conv_b"]
    head_w, head_b = params["head_w"], params["head_b"]
    cb, cin = conv_w.shape[0], conv_w.shape[1]
    n_class = head_w.shape[0]
    k = 9 * cin
    assert k <= K_PAD and cb <= CB_PAD and n_class <= NCLS_PAD

    # (Cb, Cin, 3, 3) -> (3, 3, Cin, Cb) -> (9*Cin, Cb); zero-pad to (K_PAD, CB_PAD).
    cw = jnp.transpose(conv_w, (2, 3, 1, 0)).reshape(k, cb)
    cw = jnp.pad(cw, ((0, K_PAD - k), (0, CB_PAD - cb)))
    cbias = jnp.pad(conv_b, (0, CB_PAD - cb)).reshape(1, CB_PAD)

    # (n_class, Cb) -> (Cb, n_class); fold the mean's 1/H; zero-pad to (128, 128).
    hw = jnp.transpose(head_w, (1, 0)) * (1.0 / float(height))
    hw = jnp.pad(hw, ((0, CB_PAD - cb), (0, NCLS_PAD - n_class)))
    hbias = jnp.pad(head_b, (0, NCLS_PAD - n_class)).reshape(1, NCLS_PAD)

    return {
        "conv_w": cw.astype(jnp.bfloat16),
        "conv_b": cbias.astype(jnp.float32),
        "head_w": hw.astype(jnp.bfloat16),
        "head_b": hbias.astype(jnp.float32),
        "n_class": n_class,
    }


# ------------------------------ forward pass -------------------------------- #

def _im2col(x_nchw):
    """NCHW -> lane-dense im2col (B, H*W, K_PAD) bf16 for the SAME 3x3 conv."""
    B, Cin, H, W = x_nchw.shape
    k = 9 * Cin
    x_nhwc = jnp.transpose(x_nchw, (0, 2, 3, 1))
    xp = jnp.pad(x_nhwc, ((0, 0), (1, 1), (1, 1), (0, 0)))
    taps = [xp[:, dh:dh + H, dw:dw + W, :] for dh in range(3) for dw in range(3)]
    patches = jnp.concatenate(taps, axis=-1).reshape(B, H * W, k)
    patches = jnp.pad(patches, ((0, 0), (0, 0), (0, K_PAD - k)))
    return patches.astype(jnp.bfloat16)


def rec_model_forward(x_nchw, kparams):
    """RecModelForJava.forward: backbone -> neck -> head, fused in one pallas_call.

    x_nchw : (B, Cin, H, W) f32, as the PyTorch module receives it.
    returns: (B, W, n_class) f32 CTC logits.
    """
    B, Cin, H, W = x_nchw.shape
    n_class = kparams["n_class"]

    patches = _im2col(x_nchw)                       # (B, H*W, K_PAD) bf16

    grid_spec = pltpu.PrefetchScalarGridSpec(
        num_scalar_prefetch=0,
        grid=(B,),                                  # one step per batch element
        in_specs=[
            pl.BlockSpec((None, H * W, K_PAD), lambda b: (b, 0, 0)),
            pl.BlockSpec((K_PAD, CB_PAD), lambda b: (0, 0)),
            pl.BlockSpec((1, CB_PAD), lambda b: (0, 0)),
            pl.BlockSpec((CB_PAD, NCLS_PAD), lambda b: (0, 0)),
            pl.BlockSpec((1, NCLS_PAD), lambda b: (0, 0)),
        ],
        out_specs=pl.BlockSpec((None, W, NCLS_PAD), lambda b: (b, 0, 0)),
    )

    logits_pad = pl.pallas_call(
        fused_rec_kernel,
        out_shape=jax.ShapeDtypeStruct((B, W, NCLS_PAD), jnp.float32),
        grid_spec=grid_spec,
        compiler_params=pltpu.CompilerParams(
            dimension_semantics=("parallel",),      # v7x: shard B across both TCs
        ),
    )(patches, kparams["conv_w"], kparams["conv_b"],
      kparams["head_w"], kparams["head_b"])

    # Strip the lane padding back to the real class count.
    return logits_pad[:, :, :n_class]


# --------------------------- pure-JAX reference ----------------------------- #

def reference_forward(x_nchw, params):
    """Reference that mirrors the kernel's bf16-input / f32-accumulate numerics."""
    conv_w, conv_b = params["conv_w"], params["conv_b"]
    head_w, head_b = params["head_w"], params["head_b"]
    B, Cin, H, W = x_nchw.shape
    Cb = conv_w.shape[0]
    n_class = head_w.shape[0]
    k = 9 * Cin

    x = jnp.transpose(x_nchw, (0, 2, 3, 1))
    xp = jnp.pad(x, ((0, 0), (1, 1), (1, 1), (0, 0)))
    taps = [xp[:, dh:dh + H, dw:dw + W, :] for dh in range(3) for dw in range(3)]
    patches = jnp.concatenate(taps, axis=-1).astype(jnp.bfloat16)    # (B, H, W, 9*Cin)

    w = jnp.transpose(conv_w, (2, 3, 1, 0)).reshape(k, Cb).astype(jnp.bfloat16)
    conv = jnp.einsum("bhwk,kc->bhwc", patches, w,
                      preferred_element_type=jnp.float32)
    conv = jnp.maximum(conv + conv_b.reshape(1, 1, 1, Cb), 0.0)

    pooled_sum = jnp.sum(conv, axis=1).astype(jnp.bfloat16)          # (B, W, Cb)
    hw = (jnp.transpose(head_w, (1, 0)) / float(H)).astype(jnp.bfloat16)
    logits = jnp.einsum("bwc,cn->bwn", pooled_sum, hw,
                        preferred_element_type=jnp.float32)
    return logits + head_b.reshape(1, 1, n_class)


# --------------------------------- main ------------------------------------- #

if __name__ == "__main__":
    B, Cin, H, W = 2, 4, 16, 16
    n_class = 37
    backbone_channels = 32

    key = jax.random.PRNGKey(0)
    x = jax.random.normal(key, (B, Cin, H, W), dtype=jnp.float32)   # NCHW, like torch

    params = make_params(Cin, backbone_channels, n_class, seed=0)
    kparams = prepare_kernel_params(params, height=H)

    fwd = jax.jit(lambda inp: rec_model_forward(inp, kparams))
    out = jax.block_until_ready(fwd(x))

    assert out.shape == (B, W, n_class), out.shape
    assert out.dtype == jnp.float32

    ref = jax.block_until_ready(reference_forward(x, params))
    max_err = float(np.max(np.abs(np.asarray(out) - np.asarray(ref))))
    assert np.allclose(np.asarray(out), np.asarray(ref), atol=2e-2, rtol=2e-2), max_err

    print("KERNEL_OK")
</pallas_src>

<mosaic_0001>
module attributes {stable_mosaic.version = 11 : i64} {
  func.func @fused_rec_kernel(%arg0: i32, %arg1: memref<1x256x128xbf16, #tpu.memory_space<vmem>>, %arg2: memref<128x128xbf16, #tpu.memory_space<vmem>>, %arg3: memref<1x128xf32, #tpu.memory_space<vmem>>, %arg4: memref<128x128xbf16, #tpu.memory_space<vmem>>, %arg5: memref<1x128xf32, #tpu.memory_space<vmem>>, %arg6: memref<1x16x128xf32, #tpu.memory_space<vmem>>) attributes {dimension_semantics = [#tpu.dimension_semantics<parallel>], iteration_bounds = array<i64: 2>, scalar_prefetch = 0 : i64, scratch_operands = 0 : i64, tpu.core_type = #tpu.core_type<tc>, window_params = [{transform_indices = @transform_0, window_bounds = array<i64: 1, 256, 128>}, {pipeline_mode = #tpu.pipeline_mode<synchronous>, transform_indices = @transform_1, window_bounds = array<i64: 128, 128>}, {pipeline_mode = #tpu.pipeline_mode<synchronous>, transform_indices = @transform_2, window_bounds = array<i64: 1, 128>}, {pipeline_mode = #tpu.pipeline_mode<synchronous>, transform_indices = @transform_3, window_bounds = array<i64: 128, 128>}, {pipeline_mode = #tpu.pipeline_mode<synchronous>, transform_indices = @transform_4, window_bounds = array<i64: 1, 128>}, {transform_indices = @transform_5, window_bounds = array<i64: 1, 16, 128>}]} {
    %c0 = arith.constant 0 : index
    %c0_0 = arith.constant 0 : index
    %c0_1 = arith.constant 0 : index
    %0 = vector.load %arg1[%c0, %c0_0, %c0_1] : memref<1x256x128xbf16, #tpu.memory_space<vmem>>, vector<1x256x128xbf16>
    %1 = vector.shape_cast %0 : vector<1x256x128xbf16> to vector<256x128xbf16>
    %c0_2 = arith.constant 0 : index
    %c0_3 = arith.constant 0 : index
    %2 = vector.load %arg2[%c0_2, %c0_3] : memref<128x128xbf16, #tpu.memory_space<vmem>>, vector<128x128xbf16>
    %cst = arith.constant dense<0.000000e+00> : vector<256x128xf32>
    %3 = tpu.matmul %1, %2, %cst {dimension_numbers = #tpu.dot_dimension_numbers<[1], [0], [0], [1], [0, 0, 1, 1], [], []>} : vector<256x128xbf16>, vector<128x128xbf16>, vector<256x128xf32> -> vector<256x128xf32>
    %c0_4 = arith.constant 0 : index
    %c0_5 = arith.constant 0 : index
    %4 = vector.load %arg3[%c0_4, %c0_5] : memref<1x128xf32, #tpu.memory_space<vmem>>, vector<1x128xf32>
    %5 = vector.broadcast %4 : vector<1x128xf32> to vector<256x128xf32>
    %6 = arith.addf %3, %5 : vector<256x128xf32>
    %cst_6 = arith.constant 0.000000e+00 : f32
    %7 = vector.broadcast %cst_6 : f32 to vector<256x128xf32>
    %8 = arith.maximumf %6, %7 : vector<256x128xf32>
    %9 = vector.shape_cast %8 : vector<256x128xf32> to vector<16x16x128xf32>
    %cst_7 = arith.constant dense<0.000000e+00> : vector<16x128xf32>
    %10 = vector.multi_reduction <add>, %9, %cst_7 [0] : vector<16x16x128xf32> to vector<16x128xf32>
    %11 = arith.truncf %10 : vector<16x128xf32> to vector<16x128xbf16>
    %c0_8 = arith.constant 0 : index
    %c0_9 = arith.constant 0 : index
    %12 = vector.load %arg4[%c0_8, %c0_9] : memref<128x128xbf16, #tpu.memory_space<vmem>>, vector<128x128xbf16>
    %cst_10 = arith.constant dense<0.000000e+00> : vector<16x128xf32>
    %13 = tpu.matmul %11, %12, %cst_10 {dimension_numbers = #tpu.dot_dimension_numbers<[1], [0], [0], [1], [0, 0, 1, 1], [], []>} : vector<16x128xbf16>, vector<128x128xbf16>, vector<16x128xf32> -> vector<16x128xf32>
    %c0_11 = arith.constant 0 : index
    %c0_12 = arith.constant 0 : index
    %14 = vector.load %arg5[%c0_11, %c0_12] : memref<1x128xf32, #tpu.memory_space<vmem>>, vector<1x128xf32>
    %15 = vector.broadcast %14 : vector<1x128xf32> to vector<16x128xf32>
    %16 = arith.addf %13, %15 : vector<16x128xf32>
    %c0_13 = arith.constant 0 : index
    %c0_14 = arith.constant 0 : index
    %c0_15 = arith.constant 0 : index
    %17 = vector.load %arg6[%c0_13, %c0_14, %c0_15] : memref<1x16x128xf32, #tpu.memory_space<vmem>>, vector<1x16x128xf32>
    %18 = vector.shape_cast %17 : vector<1x16x128xf32> to vector<16x128xf32>
    %19 = vector.shape_cast %16 : vector<16x128xf32> to vector<1x16x128xf32>
    tpu.vector_store %arg6[%c0_13, %c0_14, %c0_15], %19 {strides = array<i32>} : memref<1x16x128xf32, #tpu.memory_space<vmem>>, vector<1x16x128xf32>,
    return
  }
  func.func @transform_0(%arg0: i32) -> (i32, i32, i32) {
    %c0_i32 = arith.constant 0 : i32
    %c0_i32_0 = arith.constant 0 : i32
    %c0_i32_1 = arith.constant 0 : i32
    return %arg0, %c0_i32, %c0_i32_0 : i32, i32, i32
  }
  func.func @transform_1(%arg0: i32) -> (i32, i32) {
    %c0_i32 = arith.constant 0 : i32
    %c0_i32_0 = arith.constant 0 : i32
    %c0_i32_1 = arith.constant 0 : i32
    return %c0_i32, %c0_i32_0 : i32, i32
  }
  func.func @transform_2(%arg0: i32) -> (i32, i32) {
    %c0_i32 = arith.constant 0 : i32
    %c0_i32_0 = arith.constant 0 : i32
    %c0_i32_1 = arith.constant 0 : i32
    return %c0_i32, %c0_i32_0 : i32, i32
  }
  func.func @transform_3(%arg0: i32) -> (i32, i32) {
    %c0_i32 = arith.constant 0 : i32
    %c0_i32_0 = arith.constant 0 : i32
    %c0_i32_1 = arith.constant 0 : i32
    return %c0_i32, %c0_i32_0 : i32, i32
  }
  func.func @transform_4(%arg0: i32) -> (i32, i32) {
    %c0_i32 = arith.constant 0 : i32
    %c0_i32_0 = arith.constant 0 : i32
    %c0_i32_1 = arith.constant 0 : i32
    return %c0_i32, %c0_i32_0 : i32, i32
  }
  func.func @transform_5(%arg0: i32) -> (i32, i32, i32) {
    %c0_i32 = arith.constant 0 : i32
    %c0_i32_0 = arith.constant 0 : i32
    %c0_i32_1 = arith.constant 0 : i32
    return %arg0, %c0_i32, %c0_i32_0 : i32, i32, i32
  }
}

</mosaic_0001>

<bundles_post_ra>
// kernel: _lambda_.1
= control target key start
LH: loop header
LB: loop body
LE: loop exit
PB: predicated region body
PF: predicated region fallthrough
CT: control target
= control target key end

     0   :  { %10 = vsyncpa [#allocation3], 0  ;;  %s1369_s0 = inlined_call_operand.vmem [shape: bf16[2,256,128], index: 0, kind: input, shape index: {}]   ;;  %s1370_s1 = inlined_call_operand.vmem [shape: bf16[128,128], index: 1, kind: input, shape index: {}]   ;;  %s1371_s2 = inlined_call_operand.vmem [shape: f32[1,128], index: 2, kind: input, shape index: {}]   ;;  %s1372_s3 = inlined_call_operand.vmem [shape: bf16[128,128], index: 3, kind: input, shape index: {}]   ;;  %s1373_s4 = inlined_call_operand.vmem [shape: f32[1,128], index: 4, kind: input, shape index: {}]   ;;  %s1374_s5 = inlined_call_operand.hbm [shape: f32[2,16,128], index: 5, kind: output, shape index: {}]  }
   0x1   :  { %12 = vsyncpa [#allocation3 + $0x1], 0  ;;  %s1160_s18 = smov 0   ;;  %s1162_s19 = smov 0  }
   0x2   :  { %s1164_s20 = smov 0   ;;  %s1166_s21 = smov 0  }
   0x3 LB: > { %s1181_s22 = sadd.s32 4294967295, %s1123_s21   ;;  %s837_s23 = sadd.s32 4294967294, %s1123_s21   ;;  %s1123_s21 = sphi %s1166_s21, %s1380_s21   ;;  %s1119_s20 = sphi %s1164_s20, %s1379_s20   ;;  %s1115_s19 = sphi %s1162_s19, %s1378_s19   ;;  %s1111_s18 = sphi %s1160_s18, %s1377_s18  }
   0x4   : > { %s1185_s24 = sadd.s32 1, %s1123_s21   ;;  %s135_s25 = sadd.s32 1, %s1119_s20 }
   0x5   : > { %s132_s26 = ssub.s32 %s1123_s21, %s1185_s24  ;;  %p145_p0 = scmp.ne.s32.totalorder %s1119_s20, %s1115_s19 }
   0x6   : > { %p133_p1 = scmp.eq.s32.totalorder %s132_s26, 0  ;;  %p146_p2 = scmp.eq.s32.totalorder %s1181_s22, 1 }
   0x7   : > { %p151_p3 = scmp.ne.s32.totalorder %s1115_s19, %s1111_s18  ;;  %p152_p4 = scmp.eq.s32.totalorder %s837_s23, 1 }
   0x8   : > { %s1196_s27 = scalar_select %p133_p1, %s1119_s20, %s135_s25  }
   0x9   : > { %p1198_p5 = por %p146_p2, %p145_p0  ;;  %p1202_p6 = por %p152_p4, %p151_p3 }
   0xa   : > { %p840_p7 = scmp.ge.s32.totalorder %s1123_s21, 1  ;;  %p190_p8 = scmp.lt.s32.totalorder %s1123_s21, 3 }
   0xc   : > { %p191_p9 = pnand %p840_p7, %p190_p8 }
   0xd   : > { %v1029_v0 = vld [vmem:[%s1370_s1] sm:$0xff] (!%p191_p9)   ;;  %p218_p10 = scmp.lt.s32.totalorder (!%p191_p9), %s1181_s22, 1  ;;  %v1030_v1 = vld [vmem:[%s1370_s1 + $0x8] sm:$0xff] (!%p191_p9)   ;;  %v1031_v2 = vld [vmem:[%s1370_s1 + $0x10] sm:$0xff] (!%p191_p9)   ;;  %v1125_v25 = vmov (!%p191_p9), 0.0   ;;  %vm1126_vm0 = vmmov (!%p191_p9), 0  }
   0xe   : > { %194 = sbr.rel (%p191_p9) target bundleno = 558 (0x22e), region = 40  ;;  %918 = vmatprep.subr.bf16.mxu0 (!%p191_p9), %v1029_v0  ;;  %v1032_v3 = vld [vmem:[%s1370_s1 + $0x18] sm:$0xff] (!%p191_p9)   ;;  %v1033_v5 = vld [vmem:[%s1370_s1 + $0x20] sm:$0xff] (!%p191_p9)   ;;  %v1034_v6 = vld [vmem:[%s1370_s1 + $0x28] sm:$0xff] (!%p191_p9)   ;;  %966 = vmatprep.subr.bf16.mxu1 (!%p191_p9), %v1125_v25  ;;  %s884_s23 = sshll.u32 (!%p191_p9), %s1181_s22, 8 }
   0xf   : > { %919 = vmatpush3.bf16.msra.mxu0 (!%p191_p9), %v1029_v0  ;;  %v1035_v7 = vld [vmem:[%s1370_s1 + $0x30] sm:$0xff] (!%p191_p9)   ;;  %v1036_v8 = vld [vmem:[%s1370_s1 + $0x38] sm:$0xff] (!%p191_p9)   ;;  %v1053_v24 = vld [vmem:[%s1372_s3] sm:$0xff] (!%p191_p9)   ;;  %982 = vmatprep.mubr.msk.bf16.mxu1 (!%p191_p9), %vm1126_vm0, %v1125_v25  ;;  %s1326_s30 = scalar_lea.hbm (!%p191_p9), %s1374_s5, %s884_s23  ;;  %s1127_s7 = smov (!%p191_p9), [#allocation2]  }
  0x10   : > { %920 = vmatprep.subr.bf16.mxu0 (!%p191_p9), %v1030_v1  ;;  %967 = vmatpush3.bf16.msra.mxu1 (!%p191_p9), %v1053_v24  ;;  %v1054_v26 = vld [vmem:[%s1372_s3 + $0x8] sm:$0xff] (!%p191_p9)   ;;  %v1055_v27 = vld [vmem:[%s1372_s3 + $0x10] sm:$0xff] (!%p191_p9)   ;;  %v1056_v28 = vld [vmem:[%s1372_s3 + $0x18] sm:$0xff] (!%p191_p9)   ;;  %s1065_s8 = sshll.u32 (!%p191_p9), %s1127_s7, 4  ;;  %s1066_s8 = int_to_ptr.vmem [resolvable:$false] %s1065_s8 }
  0x11   : > { %968 = vmatprep.subr.bf16.mxu1 (!%p191_p9), %v1125_v25  ;;  %v1057_v29 = vld [vmem:[%s1372_s3 + $0x20] sm:$0xff] (!%p191_p9)   ;;  %v1058_v30 = vld [vmem:[%s1372_s3 + $0x28] sm:$0xff] (!%p191_p9)   ;;  %v1059_v31 = vld [vmem:[%s1372_s3 + $0x30] sm:$0xff] (!%p191_p9)  }
  0x12   : > { %v1060_v32 = vld [vmem:[%s1372_s3 + $0x38] sm:$0xff] (!%p191_p9)   ;;  %v1282_v33 = vld [vmem:[%s1371_s2] ss:$0 sm:$0xff] (!%p191_p9) }
  0x13   : > { %921 = vmatpush3.bf16.msra.mxu0 (!%p191_p9), %v1030_v1 }
  0x14   : > { %922 = vmatprep.subr.bf16.mxu0 (!%p191_p9), %v1031_v2  ;;  %969 = vmatpush3.bf16.msra.mxu1 (!%p191_p9), %v1054_v26 }
  0x15   : > { %s219_s9 = scalar_select %p218_p10, %s1181_s22, 1  ;;  %970 = vmatprep.subr.bf16.mxu1 %v1125_v25 }
  0x17   : > { %s883_s12 = sshll.u32 %s219_s9, 7  ;;  %923 = vmatpush3.bf16.msra.mxu0 %v1031_v2  ;;  %s1067_s9 = scalar_lea.vmem %s1066_s8, 512 }
  0x18   : > { %s1222_s15 = scalar_lea.vmem %s1369_s0, %s883_s12  ;;  %924 = vmatprep.subr.bf16.mxu0 %v1032_v3  ;;  %971 = vmatpush3.bf16.msra.mxu1 %v1055_v27  ;;  %s215_s12 = sand.u32 1, %s1115_s19  }
  0x19   : > { %v1037_v4 = vld [vmem:[%s1222_s15] sm:$0xff]   ;;  %v1038_v9 = vld [vmem:[%s1222_s15 + $0x8] sm:$0xff]   ;;  %v1039_v10 = vld [vmem:[%s1222_s15 + $0x10] sm:$0xff]   ;;  %972 = vmatprep.subr.bf16.mxu1 %v1125_v25  ;;  %s841_s13 = sshll.u32 %s215_s12, 4  ;;  %s1328_s6 = scalar_lea.sflag [#allocation3], %s215_s12 }
  0x1a   : > { %934 = vmatprep.mubr.bf16.mxu0 %v1037_v4  ;;  %v1040_v11 = vld [vmem:[%s1222_s15 + $0x18] sm:$0xff]   ;;  %v1041_v12 = vld [vmem:[%s1222_s15 + $0x20] sm:$0xff]   ;;  %v1042_v13 = vld [vmem:[%s1222_s15 + $0x28] sm:$0xff]  }
  0x1b   : > { %925 = vmatpush3.bf16.msra.mxu0 %v1032_v3  ;;  %v1043_v14 = vld [vmem:[%s1222_s15 + $0x30] sm:$0xff]   ;;  %v1044_v15 = vld [vmem:[%s1222_s15 + $0x38] sm:$0xff]   ;;  %v1045_v16 = vld [vmem:[%s1222_s15 + $0x40] sm:$0xff]  }
  0x1c   : > { %926 = vmatprep.subr.bf16.mxu0 %v1033_v5  ;;  %v1046_v17 = vld [vmem:[%s1222_s15 + $0x48] sm:$0xff]   ;;  %v1047_v18 = vld [vmem:[%s1222_s15 + $0x50] sm:$0xff]   ;;  %v1048_v19 = vld [vmem:[%s1222_s15 + $0x58] sm:$0xff]   ;;  %973 = vmatpush3.bf16.msra.mxu1 %v1056_v28 }
  0x1d   : > { %v1049_v20 = vld [vmem:[%s1222_s15 + $0x60] sm:$0xff]   ;;  %v1050_v21 = vld [vmem:[%s1222_s15 + $0x68] sm:$0xff]   ;;  %v1051_v22 = vld [vmem:[%s1222_s15 + $0x70] sm:$0xff]   ;;  %974 = vmatprep.subr.bf16.mxu1 %v1125_v25 }
  0x1e   : > { %v1052_v23 = vld [vmem:[%s1222_s15 + $0x78] sm:$0xff]   ;;  %s217_s15 = scalar_lea.vmem [#allocation2], %s841_s13 }
  0x1f   : > { %927 = vmatpush3.bf16.msra.mxu0 %v1033_v5  ;;  %s775_s17 = sshll.u32 %s217_s15, 4  ;;  %s1321_s17 = int_to_ptr.vmem [resolvable:$true] %s775_s17 }
  0x20   : > { %928 = vmatprep.subr.bf16.mxu0 %v1034_v6  ;;  %975 = vmatpush3.bf16.msra.mxu1 %v1057_v29  ;;  %s1061_s22 = scalar_lea.vmem %s1321_s17, 256  ;;  %p1068_p0 = scmp.lt.s32.totalorder %s1321_s17, %s1066_s8 }
  0x21   : > { %976 = vmatprep.subr.bf16.mxu1 %v1125_v25  ;;  %p1062_p11 = scmp.ne.s32.totalorder %s1321_s17, %s1061_s22  ;;  %p1069_p1 = scmp.lt.s32.totalorder %s1067_s9, %s1061_s22 }
  0x23   : > { %929 = vmatpush3.bf16.msra.mxu0 %v1034_v6  ;;  %p1063_p12 = pnand %p1062_p11, %p1198_p5  ;;  %p1070_p2 = por %p1069_p1, %p1068_p0 }
  0x24   : > { %930 = vmatprep.subr.bf16.mxu0 %v1035_v7  ;;  %977 = vmatpush3.bf16.msra.mxu1 %v1058_v30 }
  0x25   : > { %978 = vmatprep.subr.bf16.mxu1 %v1125_v25  ;;  %p1064_p13 = pneg %p1063_p12 }
  0x27   : > { %931 = vmatpush3.bf16.msra.mxu0 %v1035_v7  ;;  %p1071_p3 = pnand %p1070_p2, %p1064_p13 }
  0x28   : > { %932 = vmatprep.subr.bf16.mxu0 %v1036_v8  ;;  %979 = vmatpush3.bf16.msra.mxu1 %v1059_v31 }
  0x29   : > { %980 = vmatprep.subr.bf16.mxu1 %v1125_v25 }
  0x2b   : > { %933 = vmatpush3.bf16.msra.mxu0 %v1036_v8 }
  0x2c   : > { %981 = vmatpush3.bf16.msra.mxu1 %v1060_v32 }
  0x2e   : > { %935 = vmatmul.mubr.bf16.vlgmr.msra.gmra.mrb[0].mxu0 %v1038_v9 }
  0x2f   : > { %938 = vmatprep.mubr.bf16.mxu0 %v1039_v10 }
  0x36   : > { %939 = vmatmul.mubr.bf16.gmra.mrb[4].mxu0 %v1040_v11 }
  0x37   : > { %942 = vmatprep.mubr.bf16.mxu0 %v1041_v12 }
  0x3e   : > { %943 = vmatmul.mubr.bf16.gmra.mrb[8].mxu0 %v1042_v13 }
  0x3f   : > { %946 = vmatprep.mubr.bf16.mxu0 %v1043_v14 }
  0x46   : > { %947 = vmatmul.mubr.bf16.gmra.mrb[12].mxu0 %v1044_v15 }
  0x47   : > { %950 = vmatprep.mubr.bf16.mxu0 %v1045_v16 }
  0x4e   : > { %951 = vmatmul.mubr.bf16.gmra.mrb[16].mxu0 %v1046_v17 }
  0x4f   : > { %954 = vmatprep.mubr.bf16.mxu0 %v1047_v18 }
  0x56   : > { %955 = vmatmul.mubr.bf16.gmra.mrb[20].mxu0 %v1048_v19 }
  0x57   : > { %958 = vmatprep.mubr.bf16.mxu0 %v1049_v20 }
  0x5e   : > { %959 = vmatmul.mubr.bf16.gmra.mrb[24].mxu0 %v1050_v21 }
  0x5f   : > { %962 = vmatprep.mubr.bf16.mxu0 %v1051_v22 }
  0x66   : > { %963 = vmatmul.mubr.bf16.gmra.mrb[28].mxu0 %v1052_v23 }
 0x101   : > { %v936_v34 = vpop.f32.mrb[0].mxu0 }
 0x102   : > { %v466_v35 = vadd.f32 %v936_v34, %v1282_v33  ;;  %v457_v36 = vpop.f32.mrb[1].mxu0 }
 0x103   : > { %v458_v37 = vadd.f32 %v1282_v33, %v457_v36  ;;  %v937_v38 = vpop.f32.mrb[2].mxu0 }
 0x104   : > { %v586_v39 = vmax.f32 %v466_v35, 0.0  ;;  %v469_v40 = vadd.f32 %v937_v38, %v1282_v33  ;;  %v460_v41 = vpop.f32.mrb[3].mxu0 }
 0x105   : > { %v584_v42 = vmax.f32 %v458_v37, 0.0  ;;  %v461_v43 = vadd.f32 %v1282_v33, %v460_v41 }
 0x106   : > { %v587_v44 = vmax.f32 %v469_v40, 0.0 }
 0x107   : > { %v616_v45 = vadd.f32 %v586_v39, %v584_v42  ;;  %v585_v46 = vmax.f32 %v461_v43, 0.0 }
 0x109   : > { %v631_v47 = vadd.f32 %v587_v44, %v585_v46  ;;  %v940_v48 = vpop.f32.mrb[4].mxu0 }
 0x10a   : > { %v473_v49 = vpop.f32.mrb[5].mxu0  ;;  %v482_v50 = vadd.f32 %v940_v48, %v1282_v33 }
 0x10b   : > { %v474_v51 = vadd.f32 %v1282_v33, %v473_v49  ;;  %v941_v52 = vpop.f32.mrb[6].mxu0 }
 0x10c   : > { %v476_v53 = vpop.f32.mrb[7].mxu0  ;;  %v485_v55 = vadd.f32 %v941_v52, %v1282_v33  ;;  %v590_v57 = vmax.f32 %v482_v50, 0.0 }
 0x10d   : > { %v588_v54 = vmax.f32 %v474_v51, 0.0  ;;  %v477_v56 = vadd.f32 %v1282_v33, %v476_v53 }
 0x10e   : > { %v591_v60 = vmax.f32 %v485_v55, 0.0 }
 0x10f   : > { %v617_v58 = vadd.f32 %v616_v45, %v588_v54  ;;  %v589_v59 = vmax.f32 %v477_v56, 0.0 }
 0x111   : > { %v632_v61 = vadd.f32 %v631_v47, %v589_v59  ;;  %v944_v62 = vpop.f32.mrb[8].mxu0  ;;  %v618_v63 = vadd.f32 %v617_v58, %v590_v57 }
 0x112   : > { %v489_v0 = vpop.f32.mrb[9].mxu0  ;;  %v498_v1 = vadd.f32 %v944_v62, %v1282_v33 }
 0x113   : > { %v490_v2 = vadd.f32 %v1282_v33, %v489_v0  ;;  %v945_v3 = vpop.f32.mrb[10].mxu0  ;;  %v633_v4 = vadd.f32 %v632_v61, %v591_v60 }
 0x114   : > { %v492_v5 = vpop.f32.mrb[11].mxu0  ;;  %v501_v7 = vadd.f32 %v945_v3, %v1282_v33  ;;  %v594_v9 = vmax.f32 %v498_v1, 0.0 }
 0x115   : > { %v592_v6 = vmax.f32 %v490_v2, 0.0  ;;  %v493_v8 = vadd.f32 %v1282_v33, %v492_v5 }
 0x116   : > { %v595_v12 = vmax.f32 %v501_v7, 0.0 }
 0x117   : > { %v619_v10 = vadd.f32 %v618_v63, %v592_v6  ;;  %v593_v11 = vmax.f32 %v493_v8, 0.0 }
 0x119   : > { %v634_v13 = vadd.f32 %v633_v4, %v593_v11  ;;  %v948_v14 = vpop.f32.mrb[12].mxu0  ;;  %v620_v15 = vadd.f32 %v619_v10, %v594_v9 }
 0x11a   : > { %v505_v16 = vpop.f32.mrb[13].mxu0  ;;  %v514_v17 = vadd.f32 %v948_v14, %v1282_v33 }
 0x11b   : > { %v506_v18 = vadd.f32 %v1282_v33, %v505_v16  ;;  %v949_v19 = vpop.f32.mrb[14].mxu0  ;;  %v635_v20 = vadd.f32 %v634_v13, %v595_v12 }
 0x11c   : > { %v508_v21 = vpop.f32.mrb[15].mxu0  ;;  %v517_v23 = vadd.f32 %v949_v19, %v1282_v33  ;;  %v598_v25 = vmax.f32 %v514_v17, 0.0 }
 0x11d   : > { %v596_v22 = vmax.f32 %v506_v18, 0.0  ;;  %v509_v24 = vadd.f32 %v1282_v33, %v508_v21 }
 0x11e   : > { %v599_v28 = vmax.f32 %v517_v23, 0.0 }
 0x11f   : > { %v621_v26 = vadd.f32 %v620_v15, %v596_v22  ;;  %v597_v27 = vmax.f32 %v509_v24, 0.0 }
 0x121   : > { %v636_v29 = vadd.f32 %v635_v20, %v597_v27  ;;  %v952_v30 = vpop.f32.mrb[16].mxu0  ;;  %v622_v31 = vadd.f32 %v621_v26, %v598_v25 }
 0x122   : > { %v521_v32 = vpop.f32.mrb[17].mxu0  ;;  %v530_v34 = vadd.f32 %v952_v30, %v1282_v33 }
 0x123   : > { %v522_v35 = vadd.f32 %v1282_v33, %v521_v32  ;;  %v953_v36 = vpop.f32.mrb[18].mxu0  ;;  %v637_v37 = vadd.f32 %v636_v29, %v599_v28 }
 0x124   : > { %v524_v38 = vpop.f32.mrb[19].mxu0  ;;  %v533_v40 = vadd.f32 %v953_v36, %v1282_v33  ;;  %v602_v42 = vmax.f32 %v530_v34, 0.0 }
 0x125   : > { %v600_v39 = vmax.f32 %v522_v35, 0.0  ;;  %v525_v41 = vadd.f32 %v1282_v33, %v524_v38  ;;  %v869_v35 = vld [vmem:[%s1373_s4] ss:$0 sm:$0xff] }
 0x126   : > { %v603_v45 = vmax.f32 %v533_v40, 0.0 }
 0x127   : > { %v623_v43 = vadd.f32 %v622_v31, %v600_v39  ;;  %v601_v44 = vmax.f32 %v525_v41, 0.0 }
 0x129   : > { %v638_v46 = vadd.f32 %v637_v37, %v601_v44  ;;  %v956_v47 = vpop.f32.mrb[20].mxu0  ;;  %v624_v48 = vadd.f32 %v623_v43, %v602_v42 }
 0x12a   : > { %v537_v49 = vpop.f32.mrb[21].mxu0  ;;  %v546_v50 = vadd.f32 %v956_v47, %v1282_v33 }
 0x12b   : > { %v538_v51 = vadd.f32 %v1282_v33, %v537_v49  ;;  %v957_v52 = vpop.f32.mrb[22].mxu0  ;;  %v639_v53 = vadd.f32 %v638_v46, %v603_v45 }
 0x12c   : > { %v540_v54 = vpop.f32.mrb[23].mxu0  ;;  %v549_v56 = vadd.f32 %v957_v52, %v1282_v33  ;;  %v606_v58 = vmax.f32 %v546_v50, 0.0 }
 0x12d   : > { %v604_v55 = vmax.f32 %v538_v51, 0.0  ;;  %v541_v57 = vadd.f32 %v1282_v33, %v540_v54 }
 0x12e   : > { %v607_v61 = vmax.f32 %v549_v56, 0.0 }
 0x12f   : > { %v625_v59 = vadd.f32 %v624_v48, %v604_v55  ;;  %v605_v60 = vmax.f32 %v541_v57, 0.0 }
 0x131   : > { %v640_v62 = vadd.f32 %v639_v53, %v605_v60  ;;  %v960_v63 = vpop.f32.mrb[24].mxu0  ;;  %v626_v0 = vadd.f32 %v625_v59, %v606_v58 }
 0x132   : > { %v553_v1 = vpop.f32.mrb[25].mxu0  ;;  %v562_v2 = vadd.f32 %v960_v63, %v1282_v33 }
 0x133   : > { %v554_v3 = vadd.f32 %v1282_v33, %v553_v1  ;;  %v961_v4 = vpop.f32.mrb[26].mxu0  ;;  %v641_v5 = vadd.f32 %v640_v62, %v607_v61 }
 0x134   : > { %v556_v6 = vpop.f32.mrb[27].mxu0  ;;  %v565_v8 = vadd.f32 %v961_v4, %v1282_v33  ;;  %v610_v10 = vmax.f32 %v562_v2, 0.0 }
 0x135   : > { %v608_v7 = vmax.f32 %v554_v3, 0.0  ;;  %v557_v9 = vadd.f32 %v1282_v33, %v556_v6 }
 0x136   : > { %v611_v13 = vmax.f32 %v565_v8, 0.0 }
 0x137   : > { %v627_v11 = vadd.f32 %v626_v0, %v608_v7  ;;  %v609_v12 = vmax.f32 %v557_v9, 0.0 }
 0x139   : > { %v642_v14 = vadd.f32 %v641_v5, %v609_v12  ;;  %v964_v15 = vpop.f32.mrb[28].mxu0  ;;  %v628_v16 = vadd.f32 %v627_v11, %v610_v10 }
 0x13a   : > { %v569_v17 = vpop.f32.mrb[29].mxu0  ;;  %v578_v18 = vadd.f32 %v964_v15, %v1282_v33 }
 0x13b   : > { %v570_v19 = vadd.f32 %v1282_v33, %v569_v17  ;;  %v965_v20 = vpop.f32.mrb[30].mxu0  ;;  %v643_v21 = vadd.f32 %v642_v14, %v611_v13 }
 0x13c   : > { %v572_v22 = vpop.f32.mrb[31].mxu0  ;;  %v581_v24 = vadd.f32 %v965_v20, %v1282_v33  ;;  %v614_v26 = vmax.f32 %v578_v18, 0.0 }
 0x13d   : > { %v612_v23 = vmax.f32 %v570_v19, 0.0  ;;  %v573_v25 = vadd.f32 %v1282_v33, %v572_v22 }
 0x13e   : > { %v615_v30 = vmax.f32 %v581_v24, 0.0 }
 0x13f   : > { %v629_v27 = vadd.f32 %v628_v16, %v612_v23  ;;  %v613_v28 = vmax.f32 %v573_v25, 0.0 }
 0x141   : > { %v630_v29 = vadd.f32 %v629_v27, %v614_v26  ;;  %v644_v31 = vadd.f32 %v643_v21, %v613_v28 }
 0x143   : > { %v645_v32 = vadd.f32 %v644_v31, %v615_v30 }
 0x145   : > { %v646_v34 = vpack.c.bf16 %v645_v32, %v630_v29 }
 0x147   : > { %983 = vmatmul.mubr.bf16.vlgmr.msra.gmra.mrb[0].mxu1 %v646_v34 }
 0x21a   : > { %v752_v33 = vpop.f32.mrb[0].mxu1 }
 0x21b   : > { %v753_v36 = vadd.f32 %v869_v35, %v752_v33  ;;  %v984_v37 = vpop.f32.mrb[1].mxu1 }
 0x21c   : > { %v755_v38 = vpop.f32.mrb[2].mxu1 }
 0x21d   : > { %759 = vst [vmem:[%s217_s15] sm:$0xff] %v753_v36  ;;  %v756_v39 = vadd.f32 %v869_v35, %v755_v38  ;;  %v985_v40 = vpop.f32.mrb[3].mxu1 }
 0x21f   : > { %760 = vst [vmem:[%s217_s15 + $0x8] sm:$0xff] %v756_v39 }
 0x220   : > { %1074 = shalt.err (!%p1071_p3)
}
 0x221   : > { %s1075_s10 = scalar_lea.hbm %s1326_s30, 256  ;;  %s1079_s13 = scalar_lea.hbm %s1374_s5, 512 }
 0x222   : > { %p1076_p4 = scmp.ne.s32.totalorder %s1326_s30, %s1075_s10  ;;  %p1080_p9 = scmp.lt.u32.totalorder %s1326_s30, %s1374_s5 }
 0x223   : > { %p1081_p10 = scmp.lt.u32.totalorder %s1079_s13, %s1075_s10  ;;  %p1083_p12 = scmp.lt.u32.totalorder %s1075_s10, %s1326_s30 }
 0x224   : > { %p1077_p7 = pnand %p1076_p4, %p1198_p5 }
 0x225   : > { %p1082_p11 = por %p1081_p10, %p1080_p9 }
 0x226   : > { %p1078_p8 = pneg %p1077_p7 }
 0x227   : > { %p1084_p13 = por %p1083_p12, %p1082_p11 }
 0x229   : > { %p1085_p0 = pnand %p1084_p13, %p1078_p8 }
 0x22b   : > { %1088 = shalt.err (!%p1085_p0)
}
 0x22c   : > { %s1128_s15 = smov 128   ;;  %s1129_s23 = smov 8  }
 0x22d   : > { %986 = dma.vmem_to_hbm [thread:$0]  (%p1198_p5), %s1321_s17, 256, %s1326_s30, %s1328_s6, %s1128_s15, %s1128_s15, %s1129_s23  }
 0x22e PF: > { %p992_p1 = scmp.ge.s32.totalorder %s1123_s21, 2  ;;  %s790_s25 = sand.u32 1, %s1111_s18  }
 0x22f   : > { %s791_s26 = scalar_lea.sflag [#allocation3], %s790_s25 }
 0x230   : > { %p989_p2 = pnand %p992_p1, %p1202_p6 }
 0x232   : > { %1106 = dma.done.wait (!%p989_p2), %s791_s26, 256  }
 0x233   : > { %1108 = vsyncadd (!%p989_p2), %s791_s26, 4294967040  ;;  %p15_p3 = scmp.ge.s32.totalorder %s1185_s24, 4   ;;  %s1377_s18 = smov %s1115_s19 }
 0x234   : > { %s1378_s19 = smov %s1119_s20  ;;  %s1379_s20 = smov %s1196_s27 }
 0x235   : > { %s1380_s21 = smov %s1185_s24  ;;  %17 = sbr.rel (!%p15_p3) target bundleno = 3 (0x3), region = 75 }
 0x23c   :  { %796 = vsyncpa [#allocation3], 1 }
 0x23d   :  { %798 = vsyncpa [#allocation3 + $0x1], 1 }

</bundles_post_ra>
